<compile_context>
chip_gen: v5e
topology: v5e:2x2
jax: 0.10.0
libtpu: 0.0.40
codegen_flags: <defaults>
</compile_context>

<pallas_src>
import jax
import jax.numpy as jnp
from jax.experimental import pallas as pl
from jax.experimental.pallas import tpu as pltpu


def _conv3x3_rows_kernel(x_ref, w_ref, o_ref):
    # x_ref: (1, H+2, W+2, C)  bf16 whole padded image of batch n (resident: its block
    #                          index only depends on the batch grid axis).
    # w_ref: (9*C, Cout)       bf16 folded conv weights, tap-major ((ky*3 + kx)*C + ci).
    # o_ref: (1, TH, W, Cout)  f32 conv output rows [hblk*TH, hblk*TH + TH) of batch n.
    TH = o_ref.shape[1]
    W = o_ref.shape[2]
    C = x_ref.shape[3]
    Cout = o_ref.shape[3]

    r0 = pl.program_id(1) * TH                       # first padded input row of this block
    rows = x_ref[0, pl.ds(r0, TH + 2), :, :]         # (TH+2, W+2, C) bf16

    # im2col in VMEM only: fold all 9 taps into the contraction dim (K = 9C) so the whole
    # row block is a single MXU matmul with M = TH*W.
    taps = []
    for dy in range(3):
        r_dy = rows[dy:dy + TH, :, :]                # (TH, W+2, C)
        for dx in range(3):
            taps.append(r_dy[:, dx:dx + W, :])       # (TH, W, C) shifted window
    a = jnp.concatenate(taps, axis=-1)               # (TH, W, 9C)
    a = a.reshape(TH * W, 9 * C)

    y = jnp.dot(a, w_ref[...], preferred_element_type=jnp.float32)   # (TH*W, Cout) f32
    o_ref[0, :, :, :] = y.reshape(TH, W, Cout).astype(o_ref.dtype)


def _pick_row_block(H, W, Cout, max_rows=32, out_block_budget_bytes=8 << 20):
    """Largest TH that divides H, capped at max_rows and a VMEM budget for the
    double-buffered output block (keeps tiles generation-safe, incl. v7x's 64 MiB VMEM)."""
    th = 1
    for cand in range(1, H + 1):
        if H % cand:
            continue
        if cand > max_rows:
            break
        if 2 * cand * W * Cout * 4 > out_block_budget_bytes:
            break
        th = cand
    return th


def upsample_forward(x_nchw, weight_oihw):
    """Forward of UpSample(channels=C).

    x_nchw:      (N, C, H, W)   float32
    weight_oihw: (2C, C, 3, 3)  float32 (PyTorch Conv2d weight layout, no bias)
    returns:     (N, C//2, 2H, 2W) float32  — conv to 2C channels, then PixelShuffle(2).
    """
    N, C, H, W = x_nchw.shape
    Cout = weight_oihw.shape[0]
    assert Cout == 2 * C and weight_oihw.shape[1:] == (C, 3, 3)
    r = 2
    Co = Cout // (r * r)

    TH = _pick_row_block(H, W, Cout)
    HB = H // TH

    # --- input glue: bf16 cast, NCHW -> NHWC, spatial pad=1 (one fused XLA pass) ---
    x = jnp.transpose(x_nchw.astype(jnp.bfloat16), (0, 2, 3, 1))    # (N, H, W, C)
    xp = jnp.pad(x, ((0, 0), (1, 1), (1, 1), (0, 0)))               # (N, H+2, W+2, C)

    # --- weights: OIHW -> (ky, kx, ci, co) -> (9C, Cout), tap-major to match the kernel's
    #     in-VMEM im2col concat order.  Tiny; bf16. ---
    w = jnp.transpose(weight_oihw, (2, 3, 1, 0)).reshape(9 * C, Cout).astype(jnp.bfloat16)

    in_specs = [
        # Whole padded image of batch n.  Block index is independent of the row-block
        # grid axis, so it is DMA'd from HBM once per batch and stays resident in VMEM
        # (no 3x halo re-reads).  NOTE: assumes one padded bf16 image fits VMEM; for very
        # large H*W*C switch to a pl.Element halo window or a manual rolling row buffer.
        pl.BlockSpec((1, H + 2, W + 2, C), lambda n, h: (n, 0, 0, 0)),
        pl.BlockSpec((9 * C, Cout), lambda n, h: (0, 0)),            # resident weights
    ]
    # Output block: last dim = full Cout (no 128-padding -> no inflated writes for small
    # Cout; lane-dense automatically whenever Cout % 128 == 0, i.e. realistic C >= 64).
    out_spec = pl.BlockSpec((1, TH, W, Cout), lambda n, h: (n, h, 0, 0))

    cost = pl.CostEstimate(
        flops=2 * N * H * W * 9 * C * Cout,
        transcendentals=0,
        bytes_accessed=xp.size * 2 + w.size * 2 + N * H * W * Cout * 4,
    )

    y = pl.pallas_call(
        _conv3x3_rows_kernel,
        out_shape=jax.ShapeDtypeStruct((N, H, W, Cout), jnp.float32),
        grid_spec=pltpu.PrefetchScalarGridSpec(
            num_scalar_prefetch=0,
            grid=(N, HB),
            in_specs=in_specs,
            out_specs=out_spec,
        ),
        compiler_params=pltpu.CompilerParams(
            dimension_semantics=("parallel", "parallel"),
            vmem_limit_bytes=48 * 1024 * 1024,   # safe on v7x (64 MiB physical);
                                                 # raise toward ~96 MiB on v5e/v6e.
        ),
        cost_estimate=cost,
    )(xp, w)

    # --- output glue: PixelShuffle(2) + NHWC -> NCHW (reshape + one transpose) ---
    y = y.reshape(N, H, W, Co, r, r)                 # (n, h, w, co, ry, rx)
    y = jnp.transpose(y, (0, 3, 1, 4, 2, 5))         # (n, co, h, ry, w, rx)
    return y.reshape(N, Co, H * r, W * r)            # (N, C//2, 2H, 2W)


def _upsample_ref(x_nchw, weight_oihw):
    """Pure-JAX reference: lax conv + PixelShuffle(2), fp32 throughout."""
    y = jax.lax.conv_general_dilated(
        x_nchw, weight_oihw, window_strides=(1, 1),
        padding=((1, 1), (1, 1)),
        dimension_numbers=("NCHW", "OIHW", "NCHW"))
    N, C2, H, W = y.shape
    r = 2
    Co = C2 // (r * r)
    y = y.reshape(N, Co, r, r, H, W).transpose(0, 1, 4, 2, 5, 3)
    return y.reshape(N, Co, H * r, W * r)


if __name__ == "__main__":
    key = jax.random.PRNGKey(0)
    k_x, k_w = jax.random.split(key)

    N, C, H, W = 2, 4, 16, 16
    x = jax.random.normal(k_x, (N, C, H, W), dtype=jnp.float32)

    # Deterministic synthetic Conv2d weight: shape (2C, C, 3, 3), no bias.
    fan_in = C * 3 * 3
    weight = jax.random.normal(k_w, (2 * C, C, 3, 3), dtype=jnp.float32) / jnp.sqrt(
        jnp.float32(fan_in))

    upsample = jax.jit(upsample_forward)
    out = jax.block_until_ready(upsample(x, weight))
    assert out.shape == (N, C // 2, 2 * H, 2 * W), out.shape

    # Loose tolerance: kernel uses bf16 operands with f32 accumulation.
    ref = jax.block_until_ready(_upsample_ref(x, weight))
    err = float(jnp.max(jnp.abs(out - ref)))
    assert err < 1e-1, f"max abs err {err}"

    print("KERNEL_OK")
</pallas_src>

<mosaic_0001>
module attributes {stable_mosaic.version = 11 : i64} {
  func.func @_conv3x3_rows_kernel(%arg0: i32, %arg1: i32, %arg2: memref<1x18x18x4xbf16, #tpu.memory_space<vmem>>, %arg3: memref<36x8xbf16, #tpu.memory_space<vmem>>, %arg4: memref<1x16x16x8xf32, #tpu.memory_space<vmem>>) attributes {dimension_semantics = [#tpu.dimension_semantics<parallel>, #tpu.dimension_semantics<parallel>], iteration_bounds = array<i64: 2, 1>, scalar_prefetch = 0 : i64, scratch_operands = 0 : i64, tpu.core_type = #tpu.core_type<tc>, window_params = [{transform_indices = @transform_0, window_bounds = array<i64: 1, 18, 18, 4>}, {pipeline_mode = #tpu.pipeline_mode<synchronous>, transform_indices = @transform_1, window_bounds = array<i64: 36, 8>}, {transform_indices = @transform_2, window_bounds = array<i64: 1, 16, 16, 8>}]} {
    %c16_i32 = arith.constant 16 : i32
    %0 = arith.muli %arg1, %c16_i32 : i32
    %c0 = arith.constant 0 : index
    %1 = arith.index_cast %0 : i32 to index
    %c0_0 = arith.constant 0 : index
    %c0_1 = arith.constant 0 : index
    %2 = vector.load %arg2[%c0, %1, %c0_0, %c0_1] : memref<1x18x18x4xbf16, #tpu.memory_space<vmem>>, vector<1x18x18x4xbf16>
    %3 = vector.shape_cast %2 : vector<1x18x18x4xbf16> to vector<18x18x4xbf16>
    %4 = vector.extract_strided_slice %3 {offsets = [0, 0, 0], sizes = [16, 18, 4], strides = [1, 1, 1]} : vector<18x18x4xbf16> to vector<16x18x4xbf16>
    %5 = vector.extract_strided_slice %4 {offsets = [0, 0, 0], sizes = [16, 16, 4], strides = [1, 1, 1]} : vector<16x18x4xbf16> to vector<16x16x4xbf16>
    %6 = vector.extract_strided_slice %4 {offsets = [0, 1, 0], sizes = [16, 16, 4], strides = [1, 1, 1]} : vector<16x18x4xbf16> to vector<16x16x4xbf16>
    %7 = vector.extract_strided_slice %4 {offsets = [0, 2, 0], sizes = [16, 16, 4], strides = [1, 1, 1]} : vector<16x18x4xbf16> to vector<16x16x4xbf16>
    %8 = vector.extract_strided_slice %3 {offsets = [1, 0, 0], sizes = [16, 18, 4], strides = [1, 1, 1]} : vector<18x18x4xbf16> to vector<16x18x4xbf16>
    %9 = vector.extract_strided_slice %8 {offsets = [0, 0, 0], sizes = [16, 16, 4], strides = [1, 1, 1]} : vector<16x18x4xbf16> to vector<16x16x4xbf16>
    %10 = vector.extract_strided_slice %8 {offsets = [0, 1, 0], sizes = [16, 16, 4], strides = [1, 1, 1]} : vector<16x18x4xbf16> to vector<16x16x4xbf16>
    %11 = vector.extract_strided_slice %8 {offsets = [0, 2, 0], sizes = [16, 16, 4], strides = [1, 1, 1]} : vector<16x18x4xbf16> to vector<16x16x4xbf16>
    %12 = vector.extract_strided_slice %3 {offsets = [2, 0, 0], sizes = [16, 18, 4], strides = [1, 1, 1]} : vector<18x18x4xbf16> to vector<16x18x4xbf16>
    %13 = vector.extract_strided_slice %12 {offsets = [0, 0, 0], sizes = [16, 16, 4], strides = [1, 1, 1]} : vector<16x18x4xbf16> to vector<16x16x4xbf16>
    %14 = vector.extract_strided_slice %12 {offsets = [0, 1, 0], sizes = [16, 16, 4], strides = [1, 1, 1]} : vector<16x18x4xbf16> to vector<16x16x4xbf16>
    %15 = vector.extract_strided_slice %12 {offsets = [0, 2, 0], sizes = [16, 16, 4], strides = [1, 1, 1]} : vector<16x18x4xbf16> to vector<16x16x4xbf16>
    %16 = tpu.concatenate %5, %6, %7, %9, %10, %11, %13, %14, %15 in 2 : vector<16x16x4xbf16>, vector<16x16x4xbf16>, vector<16x16x4xbf16>, vector<16x16x4xbf16>, vector<16x16x4xbf16>, vector<16x16x4xbf16>, vector<16x16x4xbf16>, vector<16x16x4xbf16>, vector<16x16x4xbf16> -> vector<16x16x36xbf16>
    %17 = vector.shape_cast %16 : vector<16x16x36xbf16> to vector<256x36xbf16>
    %c0_2 = arith.constant 0 : index
    %c0_3 = arith.constant 0 : index
    %18 = vector.load %arg3[%c0_2, %c0_3] : memref<36x8xbf16, #tpu.memory_space<vmem>>, vector<36x8xbf16>
    %cst = arith.constant dense<0.000000e+00> : vector<256x8xf32>
    %19 = tpu.matmul %17, %18, %cst {dimension_numbers = #tpu.dot_dimension_numbers<[1], [0], [0], [1], [0, 0, 1, 1], [], []>} : vector<256x36xbf16>, vector<36x8xbf16>, vector<256x8xf32> -> vector<256x8xf32>
    %20 = vector.shape_cast %19 : vector<256x8xf32> to vector<16x16x8xf32>
    %c0_4 = arith.constant 0 : index
    %c0_5 = arith.constant 0 : index
    %c0_6 = arith.constant 0 : index
    %c0_7 = arith.constant 0 : index
    %21 = vector.load %arg4[%c0_4, %c0_5, %c0_6, %c0_7] : memref<1x16x16x8xf32, #tpu.memory_space<vmem>>, vector<1x16x16x8xf32>
    %22 = vector.shape_cast %21 : vector<1x16x16x8xf32> to vector<16x16x8xf32>
    %23 = vector.shape_cast %20 : vector<16x16x8xf32> to vector<1x16x16x8xf32>
    tpu.vector_store %arg4[%c0_4, %c0_5, %c0_6, %c0_7], %23 {strides = array<i32>} : memref<1x16x16x8xf32, #tpu.memory_space<vmem>>, vector<1x16x16x8xf32>,
    return
  }
  func.func @transform_0(%arg0: i32, %arg1: i32) -> (i32, i32, i32, i32) {
    %c0_i32 = arith.constant 0 : i32
    %c0_i32_0 = arith.constant 0 : i32
    %c0_i32_1 = arith.constant 0 : i32
    %c0_i32_2 = arith.constant 0 : i32
    return %arg0, %c0_i32, %c0_i32_0, %c0_i32_1 : i32, i32, i32, i32
  }
  func.func @transform_1(%arg0: i32, %arg1: i32) -> (i32, i32) {
    %c0_i32 = arith.constant 0 : i32
    %c0_i32_0 = arith.constant 0 : i32
    %c0_i32_1 = arith.constant 0 : i32
    return %c0_i32, %c0_i32_0 : i32, i32
  }
  func.func @transform_2(%arg0: i32, %arg1: i32) -> (i32, i32, i32, i32) {
    %c0_i32 = arith.constant 0 : i32
    %c0_i32_0 = arith.constant 0 : i32
    %c0_i32_1 = arith.constant 0 : i32
    return %arg0, %arg1, %c0_i32, %c0_i32_0 : i32, i32, i32, i32
  }
}

</mosaic_0001>

<bundles_post_ra>
// kernel: upsample_forward.1
= control target key start
LH: loop header
LB: loop body
LE: loop exit
PB: predicated region body
PF: predicated region fallthrough
CT: control target
= control target key end

     0   :  { %s1648_s9 = smov 0   ;;  %s1650_s10 = smov 0   ;;  %s2540_s0 = inlined_call_operand.vmem [shape: bf16[2,18,18,4], index: 0, kind: input, shape index: {}]   ;;  %s2541_s1 = inlined_call_operand.vmem [shape: bf16[36,8], index: 1, kind: input, shape index: {}]   ;;  %s2542_s2 = inlined_call_operand.vmem [shape: f32[2,16,16,8], index: 2, kind: output, shape index: {}]  }
   0x1   :  { %s1652_s11 = smov 0  }
   0x2 LB: > { %s24_s12 = sadd.s32 1, %s1619_s10  ;;  %p1435_p0 = scmp.ge.s32.totalorder %s1623_s11, 1  ;;  %s1623_s11 = sphi %s1652_s11, %s12_s11   ;;  %s1619_s10 = sphi %s1650_s10, %s2553_s10   ;;  %s1615_s9 = sphi %s1648_s9, %s2552_s9  }
   0x3   : > { %p26_p1 = scmp.ge.s32.totalorder %s24_s12, 2  ;;  %p126_p2 = scmp.lt.s32.totalorder %s1623_s11, 3 }
   0x5   : > { %s2555_s12 = smov (%p26_p1, %s24_s12), 0  ;;  %p127_p3 = pnand %p1435_p0, %p126_p2 }
   0x7   : > { %130 = sbr.rel (%p127_p3) target bundleno = 616 (0x268), region = 28 }
   0xc   : > { %p153_p4 = scmp.lt.s32.totalorder %s1615_s9, 1  ;;  %vm356_vm0 = vsmask.f32 7424  ;;  %s1625_s17 = smov 4   ;;  %vm581_vm1 = vcmask 1046528   ;;  %vm933_vm2 = vcmask 64512  }
   0xd   : > { %s1626_s18 = smov 8   ;;  %s1627_s19 = smov 12   ;;  %vm900_vm3 = vcmask 31744   ;;  %vm966_vm4 = vcmask 97280   ;;  %vm999_vm5 = vcmask 130048   ;;  %vm1217_vm6 = vcmask 1041408  }
   0xe   : > { %s2557_s9 = smov (!%p153_p4, %s1615_s9), 1  ;;  %s1628_s20 = smov 16   ;;  %vm1032_vm7 = vcmask 162816   ;;  %vm1065_vm8 = vcmask 195584   ;;  %vm1098_vm9 = vcmask 228352   ;;  %vm1131_vm10 = vcmask 261120  }
   0xf   : > { %s1567_s13 = smul.u32 216, %s2557_s9  ;;  %s1629_s21 = smov 20   ;;  %vm1184_vm11 = vcmask 293888  }
  0x10   : > { %s1630_s22 = smov 24   ;;  %s1631_s23 = smov 32  }
  0x11   : > { %s1672_s16 = scalar_lea.vmem %s2540_s0, %s1567_s13  ;;  %s1632_s24 = smov 28  }
  0x12   : > { %v1675_v0 = vld [vmem:[%s1672_s16 + $0x30] sm:$0xff]  ;;  %v188_v1 = vld [vmem:[%s1672_s16 + $0x38] sm:$0x1]  ;;  %v182_v4 = vld [vmem:[%s1672_s16 + $0x20] sm:$0x1]  ;;  %s1537_s3 = sshll.u32 %s2557_s9, 8 }
  0x13   : > { %v1679_v2 = vld [vmem:[%s1672_s16 + $0x18] sm:$0xff]  ;;  %v328_v3 = vunpack.c.l.b16 %v188_v1  ;;  %v1683_v5 = vld [vmem:[%s1672_s16] sm:$0xff]  ;;  %v176_v6 = vld [vmem:[%s1672_s16 + $0x8] sm:$0x1]  ;;  %v406_v7 = vshrl.u32 %v1675_v0, 16  ;;  %v408_v8 = vshll.u32 %v1675_v0, 16  ;;  %v326_v9 = vunpack.c.l.b16 %v182_v4  ;;  %s2437_s6 = scalar_lea.vmem %s2542_s2, %s1537_s3 }
  0x14   : > { %v382_v10 = vshrl.u32 %v1679_v2, 16  ;;  %v191_v11 = vld [vmem:[%s1672_s16 + $0x44] sm:$0x1]  ;;  %v384_v13 = vshll.u32 %v1679_v2, 16  ;;  %v324_v14 = vunpack.c.l.b16 %v176_v6  ;;  %v358_v15 = vshrl.u32 %v1683_v5, 16  ;;  %v1695_v16 = vld [vmem:[%s1672_s16 + $0x3c] sm:$0xff] }
  0x15   : > { %v1690_v12 = vpack.c.b16 %v328_v3, %v328_v3  ;;  %v410_v17 = vrot.slane %v408_v8, 1  ;;  %v1697_v18 = vpack.c.b16 %v326_v9, %v326_v9  ;;  %v360_v19 = vshll.u32 %v1683_v5, 16  ;;  %v185_v25 = vld [vmem:[%s1672_s16 + $0x2c] sm:$0x1]  ;;  %v1709_v30 = vld [vmem:[%s1672_s16 + $0x24] sm:$0xff]  ;;  %v1742_v59 = vld [vmem:[%s1672_s16 + $0x54] sm:$0xff] }
  0x16   : > { %v329_v20 = vunpack.c.l.b16 %v191_v11  ;;  %v386_v22 = vrot.slane %v384_v13, 1  ;;  %v1701_v23 = vpack.c.b16 %v324_v14, %v324_v14  ;;  %v418_v24 = vshrl.u32 %v1695_v16, 16  ;;  %v1715_v39 = vld [vmem:[%s1672_s16 + $0xc] sm:$0xff]  ;;  %v179_v40 = vld [vmem:[%s1672_s16 + $0x14] sm:$0x1]  ;;  %v1723_v45 = vld [vmem:[%s1672_s16 + $0x60] sm:$0xff] }
  0x17   : > { %v413_v21 = vshll.u32 %v1690_v12, 16  ;;  %v411_v26 = vor.u32 %v410_v17, %v406_v7  ;;  %v389_v27 = vshll.u32 %v1697_v18, 16  ;;  %v362_v28 = vrot.slane %v360_v19, 1  ;;  %v200_v46 = vld [vmem:[%s1672_s16 + $0x68] sm:$0x1] }
  0x18   : > { %v1706_v29 = vpack.c.b16 %v329_v20, %v329_v20  ;;  %v387_v32 = vor.u32 %v386_v22, %v382_v10  ;;  %v365_v33 = vshll.u32 %v1701_v23, 16  ;;  %v420_v34 = vshll.u32 %v1695_v16, 16  ;;  %v197_v60 = vld [vmem:[%s1672_s16 + $0x5c] sm:$0x1]  ;;  %v1755_v8 = vld [vmem:[%s1672_s16 + $0x48] sm:$0xff] }
  0x19   : > { %v415_v31 = vrot.slane %v413_v21, 1  ;;  %v391_v35 = vrot.slane %v389_v27, 1  ;;  %v363_v36 = vor.u32 %v362_v28, %v358_v15  ;;  %v327_v38 = vunpack.c.l.b16 %v185_v25  ;;  %v194_v9 = vld [vmem:[%s1672_s16 + $0x50] sm:$0x1]  ;;  %v209_v21 = vld [vmem:[%s1672_s16 + $0x8c] sm:$0x1] }
  0x1a   : > { %v425_v37 = vshll.u32 %v1706_v29, 16  ;;  %v367_v42 = vrot.slane %v365_v33, 1  ;;  %v422_v43 = vrot.slane %v420_v34, 1  ;;  %v394_v44 = vshrl.u32 %v1709_v30, 16  ;;  %v1769_v27 = vld [vmem:[%s1672_s16 + $0x84] sm:$0xff]  ;;  %v1776_v34 = vld [vmem:[%s1672_s16 + $0x78] sm:$0xff] }
  0x1b   : > { %v1719_v41 = vsel %vm356_vm0, %v411_v26, %v415_v31  ;;  %v1729_v47 = vsel %vm356_vm0, %v387_v32, %v391_v35  ;;  %v1731_v49 = vpack.c.b16 %v327_v38, %v327_v38  ;;  %v396_v50 = vshll.u32 %v1709_v30, 16 }
  0x1c   : > { %557 = vrot.lane.b32.xlu2 %v1719_v41, %s1625_s17  ;;  %v427_v48 = vrot.slane %v425_v37, 1  ;;  %553 = vrot.lane.b32.xlu1 %v1729_v47, %s1625_s17  ;;  %v368_v51 = vsel %vm356_vm0, %v363_v36, %v367_v42  ;;  %v423_v52 = vor.u32 %v422_v43, %v418_v24  ;;  %v325_v53 = vunpack.c.l.b16 %v179_v40  ;;  %v206_v40 = vld [vmem:[%s1672_s16 + $0x80] sm:$0x1] }
  0x1d   : > { %v370_v54 = vshrl.u32 %v1715_v39, 16  ;;  %549 = vrot.lane.b32.xlu0 %v368_v51, %s1625_s17  ;;  %v398_v55 = vrot.slane %v396_v50, 1  ;;  %v401_v56 = vshll.u32 %v1731_v49, 16  ;;  %v372_v57 = vshll.u32 %v1715_v39, 16 }
  0x1e   : > { %v332_v58 = vunpack.c.l.b16 %v200_v46  ;;  %v1746_v61 = vsel %vm356_vm0, %v423_v52, %v427_v48  ;;  %v1748_v62 = vpack.c.b16 %v325_v53, %v325_v53  ;;  %v454_v63 = vshrl.u32 %v1723_v45, 16  ;;  %v1795_v52 = vld [vmem:[%s1672_s16 + $0x6c] sm:$0xff]  ;;  %v203_v53 = vld [vmem:[%s1672_s16 + $0x74] sm:$0x1] }
  0x1f   : > { %v456_v1 = vshll.u32 %v1723_v45, 16  ;;  %v399_v3 = vor.u32 %v398_v55, %v394_v44  ;;  %v403_v4 = vrot.slane %v401_v56, 1  ;;  %v374_v6 = vrot.slane %v372_v57, 1 }
  0x20   : > { %v1752_v7 = vpack.c.b16 %v332_v58, %v332_v58  ;;  %v377_v10 = vshll.u32 %v1748_v62, 16  ;;  %v331_v13 = vunpack.c.l.b16 %v197_v60  ;;  %v442_v14 = vshrl.u32 %v1742_v59, 16  ;;  %v1803_v58 = vld [vmem:[%s1672_s16 + $0xa8] sm:$0xff] }
  0x21   : > { %v458_v11 = vrot.slane %v456_v1, 1  ;;  %v1761_v15 = vsel %vm356_vm0, %v399_v3, %v403_v4  ;;  %v375_v17 = vor.u32 %v374_v6, %v370_v54  ;;  %v444_v20 = vshll.u32 %v1742_v59, 16  ;;  %v218_v4 = vld [vmem:[%s1672_s16 + $0xb0] sm:$0x1] }
  0x22   : > { %v461_v19 = vshll.u32 %v1752_v7, 16  ;;  %v379_v22 = vrot.slane %v377_v10, 1  ;;  %v1766_v25 = vpack.c.b16 %v331_v13, %v331_v13  ;;  %v330_v26 = vunpack.c.l.b16 %v194_v9 }
  0x23   : > { %v459_v24 = vor.u32 %v458_v11, %v454_v63  ;;  %v446_v31 = vrot.slane %v444_v20, 1  ;;  %v430_v32 = vshrl.u32 %v1755_v8, 16  ;;  %v432_v33 = vshll.u32 %v1755_v8, 16  ;;  %v1819_v20 = vld [vmem:[%s1672_s16 + $0x9c] sm:$0xff] }
  0x24   : > { %559 = vrot.lane.b32.xlu2 %v1746_v61, %s1625_s17  ;;  %v463_v28 = vrot.slane %v461_v19, 1  ;;  %555 = vrot.lane.b32.xlu1 %v1761_v15, %s1625_s17  ;;  %v1781_v35 = vsel %vm356_vm0, %v375_v17, %v379_v22  ;;  %v449_v36 = vshll.u32 %v1766_v25, 16  ;;  %v1784_v37 = vpack.c.b16 %v330_v26, %v330_v26 }
  0x25   : > { %v335_v38 = vunpack.c.l.b16 %v209_v21  ;;  %551 = vrot.lane.b32.xlu0 %v1781_v35, %s1625_s17  ;;  %v447_v42 = vor.u32 %v446_v31, %v442_v14  ;;  %v434_v43 = vrot.slane %v432_v33, 1  ;;  %v490_v44 = vshrl.u32 %v1769_v27, 16  ;;  %v215_v21 = vld [vmem:[%s1672_s16 + $0xa4] sm:$0x1] }
  0x26   : > { %v451_v46 = vrot.slane %v449_v36, 1  ;;  %v437_v48 = vshll.u32 %v1784_v37, 16  ;;  %v492_v51 = vshll.u32 %v1769_v27, 16  ;;  %v1799_v54 = vsel %vm356_vm0, %v459_v24, %v463_v28 }
  0x27   : > { %v1791_v50 = vpack.c.b16 %v335_v38, %v335_v38  ;;  %v435_v55 = vor.u32 %v434_v43, %v430_v32  ;;  %v334_v56 = vunpack.c.l.b16 %v206_v40  ;;  %v480_v57 = vshll.u32 %v1776_v34, 16  ;;  %v1836_v43 = vld [vmem:[%s1672_s16 + $0x90] sm:$0xff] }
  0x28   : > { %v439_v60 = vrot.slane %v437_v48, 1  ;;  %v494_v63 = vrot.slane %v492_v51, 1  ;;  %v478_v3 = vshrl.u32 %v1776_v34, 16  ;;  %v1809_v6 = vsel %vm356_vm0, %v447_v42, %v451_v46 }
  0x29   : > { %v497_v1 = vshll.u32 %v1791_v50, 16  ;;  %v1811_v9 = vpack.c.b16 %v334_v56, %v334_v56  ;;  %v482_v10 = vrot.slane %v480_v57, 1  ;;  %v333_v11 = vunpack.c.l.b16 %v203_v53 }
  0x2a   : > { %v1814_v13 = vsel %vm356_vm0, %v435_v55, %v439_v60  ;;  %v495_v14 = vor.u32 %v494_v63, %v490_v44  ;;  %v466_v17 = vshrl.u32 %v1795_v52, 16  ;;  %v468_v19 = vshll.u32 %v1795_v52, 16  ;;  %v212_v44 = vld [vmem:[%s1672_s16 + $0x98] sm:$0x1] }
  0x2b   : > { %v499_v22 = vrot.slane %v497_v1, 1  ;;  %v485_v24 = vshll.u32 %v1811_v9, 16  ;;  %v1825_v26 = vpack.c.b16 %v333_v11, %v333_v11  ;;  %v338_v28 = vunpack.c.l.b16 %v218_v4 }
  0x2c   : > { %565 = vrot.lane.b32.xlu2 %v1799_v54, %s1625_s17  ;;  %563 = vrot.lane.b32.xlu1 %v1809_v6, %s1625_s17  ;;  %v483_v31 = vor.u32 %v482_v10, %v478_v3  ;;  %v470_v32 = vrot.slane %v468_v19, 1  ;;  %v528_v33 = vshll.u32 %v1803_v58, 16  ;;  %v337_v42 = vunpack.c.l.b16 %v215_v21 }
  0x2d   : > { %561 = vrot.lane.b32.xlu0 %v1814_v13, %s1625_s17  ;;  %v487_v36 = vrot.slane %v485_v24, 1  ;;  %v473_v38 = vshll.u32 %v1825_v26, 16  ;;  %v1833_v40 = vpack.c.b16 %v338_v28, %v338_v28  ;;  %v516_v48 = vshll.u32 %v1819_v20, 16 }
  0x2e   : > { %v471_v46 = vor.u32 %v470_v32, %v466_v17  ;;  %v1841_v51 = vsel %vm356_vm0, %v495_v14, %v499_v22  ;;  %v526_v55 = vshrl.u32 %v1803_v58, 16  ;;  %v1844_v56 = vpack.c.b16 %v337_v42, %v337_v42  ;;  %v221_v14 = vld [vmem:[%s1672_s16 + $0xbc] sm:$0x1]  ;;  %v1861_v22 = vld [vmem:[%s1672_s16 + $0xb4] sm:$0xff] }
  0x2f   : > { %v475_v53 = vrot.slane %v473_v38, 1  ;;  %v530_v57 = vrot.slane %v528_v33, 1  ;;  %v533_v60 = vshll.u32 %v1833_v40, 16  ;;  %v514_v63 = vshrl.u32 %v1819_v20, 16 }
  0x30   : > { %v336_v1 = vunpack.c.l.b16 %v212_v44  ;;  %v1849_v3 = vsel %vm356_vm0, %v483_v31, %v487_v36  ;;  %v518_v4 = vrot.slane %v516_v48, 1  ;;  %v521_v10 = vshll.u32 %v1844_v56, 16 }
  0x31   : > { %v504_v11 = vshll.u32 %v1836_v43, 16  ;;  %v1855_v17 = vsel %vm356_vm0, %v471_v46, %v475_v53  ;;  %v502_v21 = vshrl.u32 %v1836_v43, 16  ;;  %v531_v28 = vor.u32 %v530_v57, %v526_v55 }
  0x32   : > { %2546 = vst [vmem:[#allocation2_spill] sm:$0xff] %v1855_v17  ;;  %v1857_v19 = vpack.c.b16 %v336_v1, %v336_v1  ;;  %v535_v31 = vrot.slane %v533_v60, 1  ;;  %v339_v33 = vunpack.c.l.b16 %v221_v14  ;;  %v519_v36 = vor.u32 %v518_v4, %v514_v63 }
  0x33   : > { %v506_v24 = vrot.slane %v504_v11, 1  ;;  %v523_v38 = vrot.slane %v521_v10, 1  ;;  %v540_v48 = vshll.u32 %v1861_v22, 16  ;;  %v538_v60 = vshrl.u32 %v1861_v22, 16 }
  0x34   : > { %571 = vrot.lane.b32.xlu2 %v1841_v51, %s1625_s17  ;;  %569 = vrot.lane.b32.xlu1 %v1849_v3, %s1625_s17  ;;  %v509_v32 = vshll.u32 %v1857_v19, 16  ;;  %v1870_v46 = vpack.c.b16 %v339_v33, %v339_v33  ;;  %v1874_v53 = vsel %vm356_vm0, %v531_v28, %v535_v31  ;;  %v585_v4 = vrot.slane %v1715_v39, 1 }
  0x35   : > { %567 = vrot.lane.b32.xlu0 %v1855_v17, %s1625_s17  ;;  %v507_v42 = vor.u32 %v506_v24, %v502_v21  ;;  %v1877_v55 = vsel %vm356_vm0, %v519_v36, %v523_v38  ;;  %v542_v1 = vrot.slane %v540_v48, 1  ;;  %v586_v10 = vrot.slane %v1748_v62, 1 }
  0x36   : > { %v511_v44 = vrot.slane %v509_v32, 1  ;;  %2547 = vst [vmem:[#allocation3_spill] sm:$0xff] %v1877_v55  ;;  %v545_v63 = vshll.u32 %v1870_v46, 16  ;;  %v582_v11 = vrot.slane %v1683_v5, 1  ;;  %v583_v14 = vrot.slane %v1701_v23, 1 }
  0x37   : > { %v543_v21 = vor.u32 %v542_v1, %v538_v60  ;;  %v1895_v28 = vsel %vm581_vm1, %v585_v4, %v586_v10  ;;  %v594_v62 = vrot.slane %v1675_v0, 1  ;;  %v595_v23 = vrot.slane %v1690_v12, 1 }
  0x38   : > { %v1880_v57 = vsel %vm356_vm0, %v507_v42, %v511_v44  ;;  %v547_v24 = vrot.slane %v545_v63, 1  ;;  %v584_v31 = vsel %vm581_vm1, %v582_v11, %v583_v14  ;;  %v591_v33 = vrot.slane %v1709_v30, 1 }
  0x39   : > { %v592_v36 = vrot.slane %v1731_v49, 1  ;;  %v588_v38 = vrot.slane %v1679_v2, 1  ;;  %v589_v42 = vrot.slane %v1697_v18, 1  ;;  %v1913_v44 = vsel %vm581_vm1, %v594_v62, %v595_v23 }
  0x3a   : > { %v1899_v32 = vsel %vm356_vm0, %v543_v21, %v547_v24  ;;  %v603_v12 = vrot.slane %v1742_v59, 1  ;;  %v604_v49 = vrot.slane %v1766_v25, 1  ;;  %v600_v18 = vrot.slane %v1755_v8, 1 }
  0x3b   : > { %v1916_v48 = vsel %vm581_vm1, %v591_v33, %v592_v36  ;;  %v1919_v60 = vsel %vm581_vm1, %v588_v38, %v589_v42  ;;  %v601_v1 = vrot.slane %v1784_v37, 1  ;;  %v597_v63 = vrot.slane %v1695_v16, 1 }
  0x3c   : > { %577 = vrot.lane.b32.xlu2 %v1874_v53, %s1625_s17  ;;  %575 = vrot.lane.b32.xlu1 %v1877_v55, %s1625_s17  ;;  %v598_v4 = vrot.slane %v1706_v29, 1  ;;  %v1934_v10 = vsel %vm581_vm1, %v603_v12, %v604_v49  ;;  %v612_v25 = vrot.slane %v1776_v34, 1  ;;  %v613_v37 = vrot.slane %v1811_v9, 1 }
  0x3d   : > { %573 = vrot.lane.b32.xlu0 %v1880_v57, %s1625_s17  ;;  %v1937_v11 = vsel %vm581_vm1, %v600_v18, %v601_v1  ;;  %v609_v29 = vrot.slane %v1795_v52, 1  ;;  %v610_v21 = vrot.slane %v1825_v26, 1  ;;  %v606_v24 = vrot.slane %v1723_v45, 1 }
  0x3e   : > { %v1940_v14 = vsel %vm581_vm1, %v597_v63, %v598_v4  ;;  %v1955_v62 = vsel %vm581_vm1, %v612_v25, %v613_v37  ;;  %v621_v9 = vrot.slane %v1819_v20, 1  ;;  %v622_v26 = vrot.slane %v1844_v56, 1 }
  0x3f   : > { %v1958_v23 = vsel %vm581_vm1, %v609_v29, %v610_v21  ;;  %v619_v36 = vrot.slane %v1857_v19, 1  ;;  %v615_v38 = vrot.slane %v1769_v27, 1  ;;  %v616_v42 = vrot.slane %v1791_v50, 1 }
  0x40   : > { %2548 = vst [vmem:[#allocation4_spill] sm:$0xff] %v1958_v23  ;;  %v1976_v12 = vsel %vm581_vm1, %v621_v9, %v622_v26  ;;  %v627_v50 = vrot.slane %v1861_v22, 1  ;;  %v628_v56 = vrot.slane %v1870_v46, 1  ;;  %v624_v19 = vrot.slane %v1803_v58, 1 }
  0x41   : > { %v1982_v18 = vsel %vm581_vm1, %v615_v38, %v616_v42  ;;  %v625_v1 = vrot.slane %v1833_v40, 1 }
  0x42   : > { %v1995_v63 = vsel %vm581_vm1, %v627_v50, %v628_v56 }
  0x43   : > { %v1998_v4 = vsel %vm581_vm1, %v624_v19, %v625_v1 }
  0x44   : > { %632 = vrot.lane.b32.xlu2 %v1895_v28, %s1626_s18  ;;  %630 = vrot.lane.b32.xlu1 %v584_v31, %s1626_s18  ;;  %v607_v31 = vrot.slane %v1752_v7, 1  ;;  %v618_v7 = vrot.slane %v1836_v43, 1 }
  0x45   : > { %579 = vrot.lane.b32.xlu0 %v1899_v32, %s1625_s17 }
  0x46   : > { %v1961_v33 = vsel %vm581_vm1, %v606_v24, %v607_v31  ;;  %v1979_v49 = vsel %vm581_vm1, %v618_v7, %v619_v36  ;;  %v2024_v24 = vld [vmem:[%s1672_s16 + $0xc0] sm:$0xff] }
  0x4c   : > { %638 = vrot.lane.b32.xlu2 %v1913_v44, %s1626_s18  ;;  %636 = vrot.lane.b32.xlu1 %v1916_v48, %s1626_s18 }
  0x4d   : > { %634 = vrot.lane.b32.xlu0 %v1919_v60, %s1626_s18 }
  0x54   : > { %644 = vrot.lane.b32.xlu2 %v1934_v10, %s1626_s18  ;;  %642 = vrot.lane.b32.xlu1 %v1937_v11, %s1626_s18 }
  0x55   : > { %640 = vrot.lane.b32.xlu0 %v1940_v14, %s1626_s18 }
  0x5c   : > { %650 = vrot.lane.b32.xlu2 %v1955_v62, %s1626_s18  ;;  %648 = vrot.lane.b32.xlu1 %v1958_v23, %s1626_s18 }
  0x5d   : > { %646 = vrot.lane.b32.xlu0 %v1961_v33, %s1626_s18 }
  0x64   : > { %656 = vrot.lane.b32.xlu2 %v1976_v12, %s1626_s18  ;;  %654 = vrot.lane.b32.xlu1 %v1979_v49, %s1626_s18 }
  0x65   : > { %652 = vrot.lane.b32.xlu0 %v1982_v18, %s1626_s18 }
  0x6c   : > { %667 = vrot.lane.b32.xlu2 %v1715_v39, %s1627_s19  ;;  %660 = vrot.lane.b32.xlu1 %v1995_v63, %s1626_s18 }
  0x6d   : > { %658 = vrot.lane.b32.xlu0 %v1998_v4, %s1626_s18 }
  0x74   : > { %673 = vrot.lane.b32.xlu2 %v1675_v0, %s1627_s19  ;;  %671 = vrot.lane.b32.xlu1 %v1709_v30, %s1627_s19 }
  0x75   : > { %669 = vrot.lane.b32.xlu0 %v1679_v2, %s1627_s19 }
  0x76   : > { %v558_v40 = vpop.permute.xlu2 %557 }
  0x77   : > { %v910_v56 = vsel %vm900_vm3, %v1675_v0, %v558_v40 }
  0x7c   : > { %679 = vrot.lane.b32.xlu2 %v1742_v59, %s1627_s19  ;;  %677 = vrot.lane.b32.xlu1 %v1755_v8, %s1627_s19 }
  0x7d   : > { %675 = vrot.lane.b32.xlu0 %v1695_v16, %s1627_s19 }
  0x7e   : > { %v2011_v46 = vpop.permute.xlu2 %559 }
  0x84   : > { %685 = vrot.lane.b32.xlu2 %v1776_v34, %s1627_s19  ;;  %683 = vrot.lane.b32.xlu1 %v1795_v52, %s1627_s19 }
  0x85   : > { %681 = vrot.lane.b32.xlu0 %v1723_v45, %s1627_s19 }
  0x86   : > { %v2016_v25 = vpop.permute.xlu2 %565 }
  0x8c   : > { %691 = vrot.lane.b32.xlu2 %v1819_v20, %s1627_s19  ;;  %689 = vrot.lane.b32.xlu1 %v1836_v43, %s1627_s19 }
  0x8d   : > { %687 = vrot.lane.b32.xlu0 %v1769_v27, %s1627_s19 }
  0x8e   : > { %v2021_v37 = vpop.permute.xlu2 %571  ;;  %v554_v29 = vpop.permute.xlu1 %553 }
  0x8f   : > { %v550_v21 = vpop.permute.xlu0 %549 }
  0x94   : > { %697 = vrot.lane.b32.xlu2 %v2024_v24, %s1627_s19  ;;  %695 = vrot.lane.b32.xlu1 %v1861_v22, %s1627_s19 }
  0x95   : > { %693 = vrot.lane.b32.xlu0 %v1803_v58, %s1627_s19 }
  0x96   : > { %v2029_v31 = vpop.permute.xlu2 %577  ;;  %v556_v9 = vpop.permute.xlu1 %555 }
  0x97   : > { %v552_v26 = vpop.permute.xlu0 %551 }
  0x98   : > { %v904_v7 = vsel %vm900_vm3, %v1715_v39, %v552_v26 }
  0x9c   : > { %718 = vrot.lane.b32.xlu2 %v1761_v15, %s1628_s20  ;;  %716 = vrot.lane.b32.xlu1 %v1729_v47, %s1628_s20 }
  0x9d   : > { %714 = vrot.lane.b32.xlu0 %v1781_v35, %s1628_s20 }
  0x9e   : > { %v633_v36 = vpop.permute.xlu2 %632  ;;  %v564_v38 = vpop.permute.xlu1 %563 }
  0x9f   : > { %v2040_v42 = vsel %vm933_vm2, %v904_v7, %v633_v36  ;;  %v562_v50 = vpop.permute.xlu0 %561  ;;  %v916_v26 = vsel %vm900_vm3, %v1742_v59, %v564_v38 }
  0xa4   : > { %765 = vrot.lane.b32.xlu2 %v1958_v23, %s1629_s21  ;;  %738 = vrot.lane.b32.xlu1 %v1877_v55, %s1628_s20 }
  0xa5   : > { %730 = vrot.lane.b32.xlu0 %v1855_v17, %s1628_s20 }
  0xa6   : > { %v639_v39 = vpop.permute.xlu2 %638  ;;  %v570_v35 = vpop.permute.xlu1 %569 }
  0xa7   : > { %v2051_v19 = vsel %vm933_vm2, %v910_v56, %v639_v39  ;;  %v568_v1 = vpop.permute.xlu0 %567  ;;  %v922_v38 = vsel %vm900_vm3, %v1776_v34, %v570_v35 }
  0xac   : > { %810 = vrot.lane.b32.xlu2 %v1803_v58, %s1630_s22  ;;  %802 = vrot.lane.b32.xlu1 %v1776_v34, %s1630_s22 }
  0xad   : > { %773 = vrot.lane.b32.xlu0 %v1976_v12, %s1629_s21 }
  0xae   : > { %v645_v40 = vpop.permute.xlu2 %644  ;;  %v576_v7 = vpop.permute.xlu1 %575 }
  0xaf   : > { %v2062_v36 = vsel %vm933_vm2, %v916_v26, %v645_v40  ;;  %v574_v56 = vpop.permute.xlu0 %573  ;;  %v902_v26 = vsel %vm900_vm3, %v1683_v5, %v550_v21  ;;  %v928_v34 = vsel %vm900_vm3, %v1819_v20, %v576_v7  ;;  %v908_v21 = vsel %vm900_vm3, %v1709_v30, %v556_v9 }
  0xb0   : > { %v914_v7 = vsel %vm900_vm3, %v1755_v8, %v562_v50  ;;  %v918_v50 = vsel %vm900_vm3, %v1723_v45, %v2016_v25 }
  0xb4   : > { %884 = vrot.lane.b32.xlu2 %v1955_v62, %s1631_s23  ;;  %857 = vrot.lane.b32.xlu1 %v1874_v53, %s1632_s24 }
  0xb5   : > { %849 = vrot.lane.b32.xlu0 %v1849_v3, %s1632_s24 }
  0xb6   : > { %v651_v39 = vpop.permute.xlu2 %650  ;;  %v631_v23 = vpop.permute.xlu1 %630 }
  0xb7   : > { %v2075_v40 = vsel %vm933_vm2, %v922_v38, %v651_v39  ;;  %v935_v17 = vsel %vm933_vm2, %v902_v26, %v631_v23  ;;  %v580_v55 = vpop.permute.xlu0 %579 }
  0xbc   : > { %749 = vrot.lane.b32.xlu2 %v1895_v28, %s1629_s21  ;;  %722 = vrot.lane.b32.xlu1 %v1746_v61, %s1628_s20  ;;  %v906_v28 = vsel %vm900_vm3, %v1679_v2, %v554_v29 }
  0xbd   : > { %892 = vrot.lane.b32.xlu0 %v1998_v4, %s1631_s23 }
  0xbe   : > { %v657_v5 = vpop.permute.xlu2 %656  ;;  %v637_v23 = vpop.permute.xlu1 %636 }
  0xbf   : > { %v2089_v35 = vsel %vm933_vm2, %v928_v34, %v657_v5  ;;  %v941_v38 = vsel %vm933_vm2, %v908_v21, %v637_v23  ;;  %v635_v39 = vpop.permute.xlu0 %634  ;;  %v912_v5 = vsel %vm900_vm3, %v1695_v16, %v2011_v46 }
  0xc0   : > { %v939_v26 = vsel %vm933_vm2, %v906_v28, %v635_v39 }
  0xc4   : > { %794 = vrot.lane.b32.xlu2 %v1755_v8, %s1630_s22  ;;  %786 = vrot.lane.b32.xlu1 %v1679_v2, %s1630_s22 }
  0xc5   : > { %757 = vrot.lane.b32.xlu0 %v1940_v14, %s1629_s21 }
  0xc6   : > { %v668_v9 = vpop.permute.xlu2 %667  ;;  %v643_v34 = vpop.permute.xlu1 %642 }
  0xc7   : > { %v2104_v29 = vsel %vm966_vm4, %v935_v17, %v668_v9  ;;  %v947_v21 = vsel %vm933_vm2, %v914_v7, %v643_v34  ;;  %v641_v23 = vpop.permute.xlu0 %640  ;;  %v920_v17 = vsel %vm900_vm3, %v1795_v52, %v568_v1  ;;  %v926_v1 = vsel %vm900_vm3, %v1836_v43, %v574_v56 }
  0xc8   : > { %v945_v2 = vsel %vm933_vm2, %v912_v5, %v641_v23  ;;  %v924_v7 = vsel %vm900_vm3, %v1769_v27, %v2021_v37  ;;  %v932_v5 = vsel %vm900_vm3, %v1861_v22, %v580_v55  ;;  %v930_v23 = vsel %vm900_vm3, %v1803_v58, %v2029_v31 }
  0xcc   : > { %868 = vrot.lane.b32.xlu2 %v1919_v60, %s1631_s23  ;;  %841 = vrot.lane.b32.xlu1 %v1814_v13, %s1632_s24 }
  0xcd   : > { %833 = vrot.lane.b32.xlu0 %v1729_v47, %s1632_s24 }
  0xce   : > { %v674_v8 = vpop.permute.xlu2 %673  ;;  %v649_v46 = vpop.permute.xlu1 %648 }
  0xcf   : > { %v2120_v16 = vsel %vm966_vm4, %v941_v38, %v674_v8  ;;  %v953_v28 = vsel %vm933_vm2, %v920_v17, %v649_v46  ;;  %v647_v39 = vpop.permute.xlu0 %646 }
  0xd0   : > { %v2127_v9 = vsel %vm933_vm2, %v918_v50, %v647_v39 }
  0xd4   : > { %740 = vrot.lane.b32.xlu2 %v1874_v53, %s1628_s20  ;;  %732 = vrot.lane.b32.xlu1 %v1849_v3, %s1628_s20 }
  0xd5   : > { %876 = vrot.lane.b32.xlu0 %v1937_v11, %s1631_s23 }
  0xd6   : > { %v680_v47 = vpop.permute.xlu2 %679  ;;  %v655_v38 = vpop.permute.xlu1 %654 }
  0xd7   : > { %v2138_v25 = vsel %vm966_vm4, %v947_v21, %v680_v47  ;;  %v2144_v53 = vsel %vm933_vm2, %v926_v1, %v655_v38  ;;  %v653_v34 = vpop.permute.xlu0 %652 }
  0xd8   : > { %v957_v3 = vsel %vm933_vm2, %v924_v7, %v653_v34 }
  0xdc   : > { %804 = vrot.lane.b32.xlu2 %v1769_v27, %s1630_s22  ;;  %775 = vrot.lane.b32.xlu1 %v1998_v4, %s1629_s21 }
  0xdd   : > { %767 = vrot.lane.b32.xlu0 %v1955_v62, %s1629_s21 }
  0xde   : > { %v686_v56 = vpop.permute.xlu2 %685  ;;  %v661_v21 = vpop.permute.xlu1 %660 }
  0xdf   : > { %v2156_v37 = vsel %vm966_vm4, %v953_v28, %v686_v56  ;;  %v965_v27 = vsel %vm933_vm2, %v932_v5, %v661_v21  ;;  %v659_v8 = vpop.permute.xlu0 %658  ;;  %v224_v21 = vld [vmem:[%s1672_s16 + $0xc8] sm:$0x1] }
  0xe0   : > { %v963_v4 = vsel %vm933_vm2, %v930_v23, %v659_v8 }
  0xe4   : > { %859 = vrot.lane.b32.xlu2 %v1899_v32, %s1632_s24  ;;  %851 = vrot.lane.b32.xlu1 %v1841_v51, %s1632_s24 }
  0xe5   : > { %812 = vrot.lane.b32.xlu0 %v1861_v22, %s1630_s22 }
  0xe6   : > { %v2169_v55 = vpop.permute.xlu2 %691  ;;  %v672_v62 = vpop.permute.xlu1 %671 }
  0xe7   : > { %v972_v17 = vsel %vm966_vm4, %v939_v26, %v672_v62  ;;  %v670_v58 = vpop.permute.xlu0 %669 }
  0xe8   : > { %v2174_v31 = vsel %vm966_vm4, %v2040_v42, %v670_v58 }
  0xec   : > { %724 = vrot.lane.b32.xlu2 %v1814_v13, %s1628_s20  ;;  %894 = vrot.lane.b32.xlu1 %v1995_v63, %s1631_s23 }
  0xed   : > { %886 = vrot.lane.b32.xlu0 %v1982_v18, %s1631_s23 }
  0xee   : > { %v698_v22 = vpop.permute.xlu2 %697  ;;  %v678_v50 = vpop.permute.xlu1 %677 }
  0xef   : > { %v2183_v46 = vsel %vm966_vm4, %v965_v27, %v698_v22  ;;  %v2186_v26 = vsel %vm966_vm4, %v945_v2, %v678_v50  ;;  %v676_v28 = vpop.permute.xlu0 %675  ;;  %v700_v27 = vunpack.c.l.b16 %v224_v21  ;;  %v703_v22 = vshrl.u32 %v2024_v24, 16 }
  0xf0   : > { %v2190_v42 = vsel %vm966_vm4, %v2051_v19, %v676_v28 }
  0xf1   : > { %v701_v62 = vpack.c.b16 %v700_v27, %v700_v27 }
  0xf3   : > { %v710_v50 = vshll.u32 %v701_v62, 16 }
  0xf4   : > { %788 = vrot.lane.b32.xlu2 %v1709_v30, %s1630_s22  ;;  %759 = vrot.lane.b32.xlu1 %v1937_v11, %s1629_s21  ;;  %v1168_v30 = vld [vmem:[%s2541_s1 + $0x10] sm:$0x3] }
  0xf5   : > { %751 = vrot.lane.b32.xlu0 %v1919_v60, %s1629_s21  ;;  %v1178_v1 = vunpack.c.l.b16 %v1168_v30 }
  0xf6   : > { %v719_v13 = vpop.permute.xlu2 %718  ;;  %v2201_v2 = vpop.permute.xlu1 %683 }
  0xf7   : > { %v2199_v39 = vsel %vm999_vm5, %v972_v17, %v719_v13  ;;  %v682_v47 = vpop.permute.xlu0 %681  ;;  %v1181_v60 = vpack.c.b16 %v1178_v1, %v1178_v1  ;;  %v705_v17 = vshll.u32 %v2024_v24, 16 }
  0xf8   : > { %v2205_v19 = vsel %vm966_vm4, %v2062_v36, %v682_v47  ;;  %v712_v47 = vrot.slane %v710_v50, 1 }
  0xf9   : > { %v1219_v38 = vsel %vm1217_vm6, %v1181_v60, 0 }
  0xfa   : > { %1559 = vmatpush.bf16.msra.mxu2 %v1219_v38  ;;  %1560 = vmatpush.bf16.msra.mxu3 %v1219_v38 }
  0xfb   : > { %1226 = vmatpush.bf16.msra.mxu0 %v1219_v38  ;;  %1558 = vmatpush.bf16.msra.mxu1 %v1219_v38  ;;  %v984_v38 = vsel %vm966_vm4, %v2127_v9, %v2201_v2 }
  0xfc   : > { %843 = vrot.lane.b32.xlu2 %v1809_v6, %s1632_s24  ;;  %835 = vrot.lane.b32.xlu1 %v1761_v15, %s1632_s24 }
  0xfd   : > { %796 = vrot.lane.b32.xlu0 %v1742_v59, %s1630_s22  ;;  %v1557_v59 = vld [vmem:[%s2541_s1 + $0x8] sm:$0xff] }
  0xfe   : > { %v2216_v11 = vpop.permute.xlu2 %765  ;;  %v690_v36 = vpop.permute.xlu1 %689  ;;  %1562 = vmatpush.bf16.msra.mxu2 %v1557_v59  ;;  %1563 = vmatpush.bf16.msra.mxu3 %v1557_v59 }
  0xff   : > { %v2219_v7 = vsel %vm966_vm4, %v957_v3, %v690_v36  ;;  %v688_v34 = vpop.permute.xlu0 %687  ;;  %1227 = vmatpush.bf16.msra.mxu0 %v1557_v59  ;;  %1561 = vmatpush.bf16.msra.mxu1 %v1557_v59 }
 0x100   : > { %v2223_v56 = vsel %vm966_vm4, %v2075_v40, %v688_v34  ;;  %v1556_v40 = vld [vmem:[%s2541_s1] sm:$0xff] }
 0x102   : > { %1565 = vmatpush.bf16.msra.mxu2 %v1556_v40  ;;  %1566 = vmatpush.bf16.msra.mxu3 %v1556_v40 }
 0x103   : > { %1228 = vmatpush.bf16.msra.mxu0 %v1556_v40  ;;  %1564 = vmatpush.bf16.msra.mxu1 %v1556_v40 }
 0x104   : > { %734 = vrot.lane.b32.xlu2 %v1841_v51, %s1628_s20  ;;  %878 = vrot.lane.b32.xlu1 %v1934_v10, %s1631_s23 }
 0x105   : > { %870 = vrot.lane.b32.xlu0 %v1916_v48, %s1631_s23 }
 0x106   : > { %v2234_v15 = vpop.permute.xlu2 %810  ;;  %v696_v3 = vpop.permute.xlu1 %695 }
 0x107   : > { %v2240_v5 = vsel %vm966_vm4, %v963_v4, %v696_v3  ;;  %v694_v51 = vpop.permute.xlu0 %693 }
 0x108   : > { %v2245_v23 = vsel %vm966_vm4, %v2089_v35, %v694_v51 }
 0x10c   : > { %777 = vrot.lane.b32.xlu2 %v1995_v63, %s1629_s21  ;;  %769 = vrot.lane.b32.xlu1 %v1982_v18, %s1629_s21  ;;  %v707_v63 = vrot.slane %v705_v17, 1  ;;  %v747_v18 = vrot.slane %v701_v62, 1  ;;  %v1555_v17 = vld [vmem:[%s1672_s16 + $0xcc] sm:$0xff] }
 0x10d   : > { %742 = vrot.lane.b32.xlu0 %v1899_v32, %s1628_s20  ;;  %v746_v32 = vrot.slane %v2024_v24, 1 }
 0x10e   : > { %v885_v8 = vpop.permute.xlu2 %884  ;;  %v717_v4 = vpop.permute.xlu1 %716  ;;  %v708_v13 = vor.u32 %v707_v63, %v703_v22 }
 0x10f   : > { %v2256_v35 = vsel %vm999_vm5, %v2174_v31, %v717_v4  ;;  %v2258_v58 = vpop.permute.xlu0 %714  ;;  %v2269_v1 = vsel %vm581_vm1, %v746_v32, %v747_v18  ;;  %v824_v18 = vshll.u32 %v1555_v17, 16 }
 0x110   : > { %v713_v60 = vsel %vm356_vm0, %v708_v13, %v712_v47  ;;  %v1001_v63 = vsel %vm999_vm5, %v2104_v29, %v2258_v58 }
 0x114   : > { %853 = vrot.lane.b32.xlu2 %v1880_v57, %s1632_s24  ;;  %814 = vrot.lane.b32.xlu1 %v2024_v24, %s1630_s22 }
 0x115   : > { %806 = vrot.lane.b32.xlu0 %v1836_v43, %s1630_s22 }
 0x116   : > { %v750_v31 = vpop.permute.xlu2 %749  ;;  %v739_v28 = vpop.permute.xlu1 %738 }
 0x117   : > { %v731_v30 = vpop.permute.xlu0 %730 }
 0x118   : > { %v1017_v34 = vsel %vm999_vm5, %v984_v38, %v731_v30 }
 0x119   : > { %v1050_v40 = vsel %vm1032_vm7, %v1017_v34, %v2216_v11 }
 0x11c   : > { %896 = vrot.lane.b32.xlu2 %v2269_v1, %s1631_s23  ;;  %888 = vrot.lane.b32.xlu1 %v1979_v49, %s1631_s23 }
 0x11d   : > { %861 = vrot.lane.b32.xlu0 %v713_v60, %s1632_s24 }
 0x11e   : > { %v2277_v24 = vpop.permute.xlu2 %794  ;;  %v803_v43 = vpop.permute.xlu1 %802 }
 0x11f   : > { %v774_v36 = vpop.permute.xlu0 %773  ;;  %v1083_v9 = vsel %vm1065_vm8, %v1050_v40, %v803_v43  ;;  %v822_v43 = vshrl.u32 %v1555_v17, 16 }
 0x124   : > { %761 = vrot.lane.b32.xlu2 %v1934_v10, %s1629_s21  ;;  %753 = vrot.lane.b32.xlu1 %v1916_v48, %s1629_s21  ;;  %v992_v48 = vsel %vm966_vm4, %v2144_v53, %v2169_v55 }
 0x125   : > { %726 = vrot.lane.b32.xlu0 %v1809_v6, %s1628_s20  ;;  %v1025_v6 = vsel %vm999_vm5, %v992_v48, %v739_v28  ;;  %v1034_v28 = vsel %vm1032_vm7, %v1001_v63, %v750_v31  ;;  %v2551_v63 = vld [vmem:[#allocation4_spill] sm:$0xff] }
 0x126   : > { %v869_v59 = vpop.permute.xlu2 %868  ;;  %v858_v3 = vpop.permute.xlu1 %857  ;;  %v1058_v11 = vsel %vm1032_vm7, %v1025_v6, %v774_v36  ;;  %v826_v36 = vrot.slane %v824_v18, 1 }
 0x127   : > { %v850_v2 = vpop.permute.xlu0 %849  ;;  %v1091_v55 = vsel %vm1065_vm8, %v1058_v11, %v2234_v15  ;;  %v227_v15 = vld [vmem:[%s1672_s16 + $0xd4] sm:$0x1] }
 0x128   : > { %v1116_v10 = vsel %vm1098_vm9, %v1083_v9, %v850_v2  ;;  %v1124_v27 = vsel %vm1098_vm9, %v1091_v55, %v858_v3  ;;  %v819_v22 = vunpack.c.l.b16 %v227_v15  ;;  %v827_v58 = vor.u32 %v826_v36, %v822_v43 }
 0x129   : > { %v1149_v51 = vsel %vm1131_vm10, %v1116_v10, %v885_v8 }
 0x12a   : > { %1527 = vmatmul.msk.bf16.vlgmr.msra.gmra.mxu2 %vm1184_vm11, %v1149_v51  ;;  %v820_v32 = vpack.c.b16 %v819_v22, %v819_v22 }
 0x12c   : > { %837 = vrot.lane.b32.xlu2 %v1719_v41, %s1632_s24  ;;  %798 = vrot.lane.b32.xlu1 %v1723_v45, %s1630_s22  ;;  %v829_v38 = vshll.u32 %v820_v32, 16  ;;  %v866_v10 = vrot.slane %v820_v32, 1 }
 0x12d   : > { %790 = vrot.lane.b32.xlu0 %v1675_v0, %s1630_s22 }
 0x12e   : > { %v2306_v53 = vpop.permute.xlu2 %740  ;;  %v723_v21 = vpop.permute.xlu1 %722  ;;  %v831_v31 = vrot.slane %v829_v38, 1 }
 0x12f   : > { %v893_v8 = vpop.permute.xlu0 %892  ;;  %v1009_v29 = vsel %vm999_vm5, %v2190_v42, %v723_v21  ;;  %v1027_v55 = vsel %vm999_vm5, %v2245_v23, %v2306_v53 }
 0x130   : > { %v1157_v4 = vsel %vm1131_vm10, %v1124_v27, %v893_v8  ;;  %v832_v2 = vsel %vm356_vm0, %v827_v58, %v831_v31 }
 0x131   : > { %1531 = vmatmul.msk.bf16.vlgmr.msra.gmra.mxu3 %vm1184_vm11, %v1157_v4 }
 0x134   : > { %880 = vrot.lane.b32.xlu2 %v1961_v33, %s1631_s23  ;;  %872 = vrot.lane.b32.xlu1 %v1913_v44, %s1631_s23 }
 0x135   : > { %845 = vrot.lane.b32.xlu0 %v1799_v54, %s1632_s24 }
 0x136   : > { %v2319_v0 = vpop.permute.xlu2 %804  ;;  %v787_v45 = vpop.permute.xlu1 %786 }
 0x137   : > { %v758_v62 = vpop.permute.xlu0 %757  ;;  %v1067_v47 = vsel %vm1065_vm8, %v1034_v28, %v787_v45  ;;  %v1600_v45 = vld [vmem:[%s1672_s16 + $0x3c] sm:$0xff] }
 0x13c   : > { %771 = vrot.lane.b32.xlu2 %v1979_v49, %s1629_s21  ;;  %744 = vrot.lane.b32.xlu1 %v713_v60, %s1628_s20 }
 0x13d   : > { %736 = vrot.lane.b32.xlu0 %v1880_v57, %s1628_s20  ;;  %v1042_v57 = vsel %vm1032_vm7, %v1009_v29, %v758_v62 }
 0x13e   : > { %v860_v50 = vpop.permute.xlu2 %859  ;;  %v842_v13 = vpop.permute.xlu1 %841  ;;  %v1075_v34 = vsel %vm1065_vm8, %v1042_v57, %v2277_v24  ;;  %v865_v24 = vrot.slane %v1555_v17, 1 }
 0x13f   : > { %v834_v30 = vpop.permute.xlu0 %833  ;;  %v1108_v42 = vsel %vm1098_vm9, %v1075_v34, %v842_v13 }
 0x140   : > { %v1100_v49 = vsel %vm1098_vm9, %v1067_v47, %v834_v30  ;;  %v867_v6 = vsel %vm581_vm1, %v865_v24, %v866_v10 }
 0x141   : > { %v1133_v60 = vsel %vm1131_vm10, %v1100_v49, %v869_v59 }
 0x142   : > { %1519 = vmatmul.msk.bf16.vlgmr.msra.gmra.mxu0 %vm1184_vm11, %v1133_v60 }
 0x144   : > { %816 = vrot.lane.b32.xlu2 %v1555_v17, %s1630_s22  ;;  %808 = vrot.lane.b32.xlu1 %v1819_v20, %s1630_s22  ;;  %v2549_v20 = vld [vmem:[#allocation3_spill] sm:$0xff] }
 0x145   : > { %779 = vrot.lane.b32.xlu0 %v2269_v1, %s1629_s21 }
 0x146   : > { %v725_v59 = vpop.permute.xlu2 %724  ;;  %v733_v40 = vpop.permute.xlu1 %732 }
 0x147   : > { %v877_v3 = vpop.permute.xlu0 %876  ;;  %v1019_v21 = vsel %vm999_vm5, %v2156_v37, %v733_v40  ;;  %v1011_v28 = vsel %vm999_vm5, %v2186_v26, %v725_v59 }
 0x148   : > { %v1141_v9 = vsel %vm1131_vm10, %v1108_v42, %v877_v3 }
 0x149   : > { %1523 = vmatmul.msk.bf16.vlgmr.msra.gmra.mxu1 %vm1184_vm11, %v1141_v9 }
 0x14c   : > { %890 = vrot.lane.b32.xlu2 %v1976_v12, %s1631_s23  ;;  %863 = vrot.lane.b32.xlu1 %v832_v2, %s1632_s24 }
 0x14d   : > { %855 = vrot.lane.b32.xlu0 %v2549_v20, %s1632_s24 }
 0x14e   : > { %v776_v1 = vpop.permute.xlu1 %775  ;;  %v789_v51 = vpop.permute.xlu2 %788 }
 0x14f   : > { %v768_v48 = vpop.permute.xlu0 %767  ;;  %v1060_v27 = vsel %vm1032_vm7, %v1027_v55, %v776_v1 }
 0x150   : > { %v1052_v4 = vsel %vm1032_vm7, %v1019_v21, %v768_v48 }
 0x154   : > { %728 = vrot.lane.b32.xlu2 %v1799_v54, %s1628_s20  ;;  %720 = vrot.lane.b32.xlu1 %v1719_v41, %s1628_s20  ;;  %v1085_v41 = vsel %vm1065_vm8, %v1052_v4, %v2319_v0 }
 0x155   : > { %898 = vrot.lane.b32.xlu0 %v867_v6, %s1631_s23 }
 0x156   : > { %v852_v12 = vpop.permute.xlu1 %851  ;;  %v844_v8 = vpop.permute.xlu2 %843 }
 0x157   : > { %v813_v11 = vpop.permute.xlu0 %812  ;;  %v1118_v53 = vsel %vm1098_vm9, %v1085_v41, %v852_v12 }
 0x158   : > { %v1093_v54 = vsel %vm1065_vm8, %v1060_v27, %v813_v11 }
 0x159   : > { %v1126_v23 = vsel %vm1098_vm9, %v1093_v54, %v860_v50 }
 0x15c   : > { %792 = vrot.lane.b32.xlu2 %v1600_v45, %s1630_s22  ;;  %763 = vrot.lane.b32.xlu1 %v1961_v33, %s1629_s21  ;;  %v2550_v33 = vld [vmem:[#allocation2_spill] sm:$0xff] }
 0x15d   : > { %755 = vrot.lane.b32.xlu0 %v1913_v44, %s1629_s21 }
 0x15e   : > { %v895_v37 = vpop.permute.xlu1 %894  ;;  %v735_v44 = vpop.permute.xlu2 %734 }
 0x15f   : > { %v887_v15 = vpop.permute.xlu0 %886  ;;  %v1159_v62 = vsel %vm1131_vm10, %v1126_v23, %v895_v37  ;;  %v1021_v31 = vsel %vm999_vm5, %v2223_v56, %v735_v44 }
 0x160   : > { %v1151_v17 = vsel %vm1131_vm10, %v1118_v53, %v887_v15  ;;  %1532 = vmatmul.msk.bf16.gmra.mxu3 %vm1184_vm11, %v1159_v62 }
 0x161   : > { %1528 = vmatmul.msk.bf16.gmra.mxu2 %vm1184_vm11, %v1151_v17 }
 0x164   : > { %847 = vrot.lane.b32.xlu2 %v2550_v33, %s1632_s24  ;;  %839 = vrot.lane.b32.xlu1 %v1746_v61, %s1632_s24 }
 0x165   : > { %800 = vrot.lane.b32.xlu0 %v1795_v52, %s1630_s22 }
 0x166   : > { %v760_v0 = vpop.permute.xlu1 %759  ;;  %v778_v50 = vpop.permute.xlu2 %777 }
 0x167   : > { %v752_v22 = vpop.permute.xlu0 %751  ;;  %v1044_v13 = vsel %vm1032_vm7, %v1011_v28, %v760_v0 }
 0x168   : > { %v1036_v61 = vsel %vm1032_vm7, %v2256_v35, %v752_v22 }
 0x169   : > { %v1069_v47 = vsel %vm1065_vm8, %v1036_v61, %v789_v51 }
 0x16c   : > { %882 = vrot.lane.b32.xlu1 %v2551_v63, %s1631_s23 }
 0x16d   : > { %874 = vrot.lane.b32.xlu0 %v1940_v14, %s1631_s23 }
 0x16e   : > { %v836_v32 = vpop.permute.xlu1 %835  ;;  %v854_v36 = vpop.permute.xlu2 %853 }
 0x16f   : > { %v797_v18 = vpop.permute.xlu0 %796  ;;  %v1102_v14 = vsel %vm1098_vm9, %v1069_v47, %v836_v32 }
 0x170   : > { %v1077_v52 = vsel %vm1065_vm8, %v1044_v13, %v797_v18 }
 0x171   : > { %v1110_v49 = vsel %vm1098_vm9, %v1077_v52, %v844_v8 }
 0x176   : > { %v879_v30 = vpop.permute.xlu1 %878  ;;  %v897_v29 = vpop.permute.xlu2 %896 }
 0x177   : > { %v871_v60 = vpop.permute.xlu0 %870  ;;  %v1143_v43 = vsel %vm1131_vm10, %v1110_v49, %v879_v30 }
 0x178   : > { %v1135_v26 = vsel %vm1131_vm10, %v1102_v14, %v871_v60  ;;  %1524 = vmatmul.msk.bf16.gmra.mxu1 %vm1184_vm11, %v1143_v43 }
 0x179   : > { %1520 = vmatmul.msk.bf16.gmra.mxu0 %vm1184_vm11, %v1135_v26 }
 0x17e   : > { %v770_v35 = vpop.permute.xlu1 %769  ;;  %v762_v42 = vpop.permute.xlu2 %761 }
 0x17f   : > { %v743_v38 = vpop.permute.xlu0 %742  ;;  %v1054_v34 = vsel %vm1032_vm7, %v1021_v31, %v770_v35 }
 0x180   : > { %v1029_v59 = vsel %vm999_vm5, %v2240_v5, %v743_v38 }
 0x181   : > { %v1062_v3 = vsel %vm1032_vm7, %v1029_v59, %v778_v50 }
 0x186   : > { %v815_v57 = vpop.permute.xlu1 %814  ;;  %v838_v5 = vpop.permute.xlu2 %837 }
 0x187   : > { %v807_v58 = vpop.permute.xlu0 %806  ;;  %v1095_v20 = vsel %vm1065_vm8, %v1062_v3, %v815_v57 }
 0x188   : > { %v1087_v40 = vsel %vm1065_vm8, %v1054_v34, %v807_v58 }
 0x189   : > { %v1120_v2 = vsel %vm1098_vm9, %v1087_v40, %v854_v36 }
 0x18e   : > { %v889_v9 = vpop.permute.xlu1 %888  ;;  %v881_v11 = vpop.permute.xlu2 %880 }
 0x18f   : > { %v862_v1 = vpop.permute.xlu0 %861  ;;  %v1153_v24 = vsel %vm1131_vm10, %v1120_v2, %v889_v9 }
 0x190   : > { %v1128_v56 = vsel %vm1098_vm9, %v1095_v20, %v862_v1  ;;  %1529 = vmatmul.msk.bf16.gmra.mxu2 %vm1184_vm11, %v1153_v24 }
 0x191   : > { %v1161_v10 = vsel %vm1131_vm10, %v1128_v56, %v897_v29 }
 0x192   : > { %1533 = vmatmul.msk.bf16.gmra.mxu3 %vm1184_vm11, %v1161_v10 }
 0x196   : > { %v754_v48 = vpop.permute.xlu1 %753 }
 0x197   : > { %v727_v51 = vpop.permute.xlu0 %726  ;;  %v1038_v55 = vsel %vm1032_vm7, %v2199_v39, %v754_v48 }
 0x198   : > { %v1013_v21 = vsel %vm999_vm5, %v2138_v25, %v727_v51  ;;  %v772_v25 = vpop.permute.xlu2 %771 }
 0x199   : > { %v1046_v8 = vsel %vm1032_vm7, %v1013_v21, %v762_v42 }
 0x19e   : > { %v799_v6 = vpop.permute.xlu1 %798 }
 0x19f   : > { %v791_v12 = vpop.permute.xlu0 %790  ;;  %v1079_v45 = vsel %vm1065_vm8, %v1046_v8, %v799_v6 }
 0x1a0   : > { %v1071_v27 = vsel %vm1065_vm8, %v1038_v55, %v791_v12  ;;  %v817_v17 = vpop.permute.xlu2 %816 }
 0x1a1   : > { %v1104_v54 = vsel %vm1098_vm9, %v1071_v27, %v838_v5 }
 0x1a6   : > { %v873_v4 = vpop.permute.xlu1 %872 }
 0x1a7   : > { %v846_v41 = vpop.permute.xlu0 %845  ;;  %v1137_v37 = vsel %vm1131_vm10, %v1104_v54, %v873_v4 }
 0x1a8   : > { %v1112_v23 = vsel %vm1098_vm9, %v1079_v45, %v846_v41  ;;  %1521 = vmatmul.msk.bf16.gmra.mxu0 %vm1184_vm11, %v1137_v37  ;;  %v891_v32 = vpop.permute.xlu2 %890 }
 0x1a9   : > { %v1145_v39 = vsel %vm1131_vm10, %v1112_v23, %v881_v11 }
 0x1aa   : > { %1525 = vmatmul.msk.bf16.gmra.mxu1 %vm1184_vm11, %v1145_v39 }
 0x1ad   : > { %v1270_v53 = vpop.f32.mrf.mxu2 }
 0x1ae   : > { %1326 = vst.msk [vmem:[%s2437_s6 + $0x80] sm:$0xff] %vm933_vm2, %v1270_v53  ;;  %v745_v15 = vpop.permute.xlu1 %744 }
 0x1af   : > { %v737_v62 = vpop.permute.xlu0 %736 }
 0x1b0   : > { %v1023_v63 = vsel %vm999_vm5, %v2219_v7, %v737_v62  ;;  %v1031_v7 = vsel %vm999_vm5, %v2183_v46, %v745_v15  ;;  %v729_v46 = vpop.permute.xlu2 %728 }
 0x1b1   : > { %v1056_v18 = vsel %vm1032_vm7, %v1023_v63, %v772_v25  ;;  %v1015_v40 = vsel %vm999_vm5, %v2205_v19, %v729_v46 }
 0x1b4   : > { %v1290_v33 = vpop.f32.mrf.mxu3 }
 0x1b5   : > { %1334 = vst.msk [vmem:[%s2437_s6 + $0xc0] sm:$0xff] %vm933_vm2, %v1290_v33  ;;  %v1272_v44 = vpop.f32.mrf.mxu2 }
 0x1b6   : > { %1327 = vst.msk [vmem:[%s2437_s6 + $0x88] sm:$0xff] %vm933_vm2, %v1272_v44  ;;  %v809_v0 = vpop.permute.xlu1 %808 }
 0x1b7   : > { %v780_v22 = vpop.permute.xlu0 %779  ;;  %v1089_v13 = vsel %vm1065_vm8, %v1056_v18, %v809_v0 }
 0x1b8   : > { %v1064_v49 = vsel %vm1032_vm7, %v1031_v7, %v780_v22  ;;  %v793_v31 = vpop.permute.xlu2 %792 }
 0x1b9   : > { %v1097_v14 = vsel %vm1065_vm8, %v1064_v49, %v817_v17 }
 0x1bc   : > { %v1292_v50 = vpop.f32.mrf.mxu3 }
 0x1bd   : > { %1335 = vst.msk [vmem:[%s2437_s6 + $0xc8] sm:$0xff] %vm933_vm2, %v1292_v50 }
 0x1be   : > { %v864_v28 = vpop.permute.xlu1 %863 }
 0x1bf   : > { %v1230_v61 = vpop.f32.mrf.mxu0  ;;  %v856_v52 = vpop.permute.xlu0 %855  ;;  %v1130_v36 = vsel %vm1098_vm9, %v1097_v14, %v864_v28 }
 0x1c0   : > { %1310 = vst.msk [vmem:[%s2437_s6] sm:$0xff] %vm933_vm2, %v1230_v61  ;;  %v1122_v47 = vsel %vm1098_vm9, %v1089_v13, %v856_v52  ;;  %v848_v20 = vpop.permute.xlu2 %847 }
 0x1c1   : > { %v1155_v30 = vsel %vm1131_vm10, %v1122_v47, %v891_v32 }
 0x1c2   : > { %1530 = vmatmul.msk.bf16.gmra.mxu2 %vm1184_vm11, %v1155_v30 }
 0x1c6   : > { %v1250_v60 = vpop.f32.mrf.mxu1  ;;  %v721_v43 = vpop.permute.xlu1 %720 }
 0x1c7   : > { %1318 = vst.msk [vmem:[%s2437_s6 + $0x40] sm:$0xff] %vm933_vm2, %v1250_v60  ;;  %v1232_v26 = vpop.f32.mrf.mxu0  ;;  %v899_v35 = vpop.permute.xlu0 %898  ;;  %v1007_v42 = vsel %vm999_vm5, %v2120_v16, %v721_v43 }
 0x1c8   : > { %1311 = vst.msk [vmem:[%s2437_s6 + $0x8] sm:$0xff] %vm933_vm2, %v1232_v26  ;;  %v1163_v38 = vsel %vm1131_vm10, %v1130_v36, %v899_v35 }
 0x1c9   : > { %1534 = vmatmul.msk.bf16.gmra.mxu3 %vm1184_vm11, %v1163_v38 }
 0x1ce   : > { %v1252_v29 = vpop.f32.mrf.mxu1  ;;  %v764_v57 = vpop.permute.xlu1 %763 }
 0x1cf   : > { %1319 = vst.msk [vmem:[%s2437_s6 + $0x48] sm:$0xff] %vm933_vm2, %v1252_v29  ;;  %v756_v58 = vpop.permute.xlu0 %755  ;;  %v1048_v3 = vsel %vm1032_vm7, %v1015_v40, %v764_v57 }
 0x1d0   : > { %v1040_v9 = vsel %vm1032_vm7, %v1007_v42, %v756_v58 }
 0x1d1   : > { %v1073_v1 = vsel %vm1065_vm8, %v1040_v9, %v793_v31 }
 0x1d6   : > { %v840_v34 = vpop.permute.xlu1 %839 }
 0x1d7   : > { %v801_v59 = vpop.permute.xlu0 %800  ;;  %v1106_v19 = vsel %vm1098_vm9, %v1073_v1, %v840_v34 }
 0x1d8   : > { %v1081_v2 = vsel %vm1065_vm8, %v1048_v3, %v801_v59 }
 0x1d9   : > { %v1114_v24 = vsel %vm1098_vm9, %v1081_v2, %v848_v20 }
 0x1de   : > { %v883_v56 = vpop.permute.xlu1 %882 }
 0x1df   : > { %v875_v16 = vpop.permute.xlu0 %874  ;;  %v1147_v10 = vsel %vm1131_vm10, %v1114_v24, %v883_v56 }
 0x1e0   : > { %v1139_v5 = vsel %vm1131_vm10, %v1106_v19, %v875_v16  ;;  %1526 = vmatmul.msk.bf16.gmra.mxu1 %vm1184_vm11, %v1147_v10 }
 0x1e1   : > { %1522 = vmatmul.msk.bf16.gmra.mxu0 %vm1184_vm11, %v1139_v5 }
 0x1e3   : > { %v1295_v48 = vpop.f32.mrf.mxu3 }
 0x1e4   : > { %v1275_v51 = vpop.f32.mrf.mxu2  ;;  %1336 = vst.msk [vmem:[%s2437_s6 + $0xd0] sm:$0xff] %vm933_vm2, %v1295_v48 }
 0x1e5   : > { %1328 = vst.msk [vmem:[%s2437_s6 + $0x90] sm:$0xff] %vm933_vm2, %v1275_v51 }
 0x1eb   : > { %v1297_v6 = vpop.f32.mrf.mxu3 }
 0x1ec   : > { %v1277_v12 = vpop.f32.mrf.mxu2  ;;  %1337 = vst.msk [vmem:[%s2437_s6 + $0xd8] sm:$0xff] %vm933_vm2, %v1297_v6 }
 0x1ed   : > { %1329 = vst.msk [vmem:[%s2437_s6 + $0x98] sm:$0xff] %vm933_vm2, %v1277_v12 }
 0x1f5   : > { %v1255_v11 = vpop.f32.mrf.mxu1 }
 0x1f6   : > { %v1235_v55 = vpop.f32.mrf.mxu0  ;;  %1320 = vst.msk [vmem:[%s2437_s6 + $0x50] sm:$0xff] %vm933_vm2, %v1255_v11 }
 0x1f7   : > { %1312 = vst.msk [vmem:[%s2437_s6 + $0x10] sm:$0xff] %vm933_vm2, %v1235_v55 }
 0x1fd   : > { %v1257_v21 = vpop.f32.mrf.mxu1 }
 0x1fe   : > { %v1237_v27 = vpop.f32.mrf.mxu0  ;;  %1321 = vst.msk [vmem:[%s2437_s6 + $0x58] sm:$0xff] %vm933_vm2, %v1257_v21 }
 0x1ff   : > { %1313 = vst.msk [vmem:[%s2437_s6 + $0x18] sm:$0xff] %vm933_vm2, %v1237_v27 }
 0x213   : > { %v1280_v8 = vpop.f32.mrf.mxu2 }
 0x214   : > { %1330 = vst.msk [vmem:[%s2437_s6 + $0xa0] sm:$0xff] %vm933_vm2, %v1280_v8 }
 0x215   : > { %v1300_v4 = vpop.f32.mrf.mxu3 }
 0x216   : > { %1338 = vst.msk [vmem:[%s2437_s6 + $0xe0] sm:$0xff] %vm933_vm2, %v1300_v4 }
 0x21b   : > { %v1282_v54 = vpop.f32.mrf.mxu2 }
 0x21c   : > { %1331 = vst.msk [vmem:[%s2437_s6 + $0xa8] sm:$0xff] %vm933_vm2, %v1282_v54 }
 0x21d   : > { %v1302_v45 = vpop.f32.mrf.mxu3 }
 0x21e   : > { %1339 = vst.msk [vmem:[%s2437_s6 + $0xe8] sm:$0xff] %vm933_vm2, %v1302_v45 }
 0x225   : > { %v1240_v41 = vpop.f32.mrf.mxu0 }
 0x226   : > { %1314 = vst.msk [vmem:[%s2437_s6 + $0x20] sm:$0xff] %vm933_vm2, %v1240_v41 }
 0x227   : > { %v1260_v37 = vpop.f32.mrf.mxu1 }
 0x228   : > { %1322 = vst.msk [vmem:[%s2437_s6 + $0x60] sm:$0xff] %vm933_vm2, %v1260_v37 }
 0x22d   : > { %v1242_v23 = vpop.f32.mrf.mxu0 }
 0x22e   : > { %1315 = vst.msk [vmem:[%s2437_s6 + $0x28] sm:$0xff] %vm933_vm2, %v1242_v23 }
 0x22f   : > { %v1262_v39 = vpop.f32.mrf.mxu1 }
 0x230   : > { %1323 = vst.msk [vmem:[%s2437_s6 + $0x68] sm:$0xff] %vm933_vm2, %v1262_v39 }
 0x245   : > { %v1285_v25 = vpop.f32.mrf.mxu2 }
 0x246   : > { %1332 = vst.msk [vmem:[%s2437_s6 + $0xb0] sm:$0xff] %vm933_vm2, %v1285_v25 }
 0x24c   : > { %v1305_v53 = vpop.f32.mrf.mxu3 }
 0x24d   : > { %1340 = vst.msk [vmem:[%s2437_s6 + $0xf0] sm:$0xff] %vm933_vm2, %v1305_v53  ;;  %v1287_v15 = vpop.f32.mrf.mxu2 }
 0x24e   : > { %1333 = vst.msk [vmem:[%s2437_s6 + $0xb8] sm:$0xff] %vm933_vm2, %v1287_v15 }
 0x254   : > { %v1307_v62 = vpop.f32.mrf.mxu3 }
 0x255   : > { %1341 = vst.msk [vmem:[%s2437_s6 + $0xf8] sm:$0xff] %vm933_vm2, %v1307_v62 }
 0x25d   : > { %v1265_v17 = vpop.f32.mrf.mxu1 }
 0x25e   : > { %v1245_v33 = vpop.f32.mrf.mxu0  ;;  %1324 = vst.msk [vmem:[%s2437_s6 + $0x70] sm:$0xff] %vm933_vm2, %v1265_v17 }
 0x25f   : > { %1316 = vst.msk [vmem:[%s2437_s6 + $0x30] sm:$0xff] %vm933_vm2, %v1245_v33 }
 0x265   : > { %v1267_v44 = vpop.f32.mrf.mxu1 }
 0x266   : > { %v1247_v0 = vpop.f32.mrf.mxu0  ;;  %1325 = vst.msk [vmem:[%s2437_s6 + $0x78] sm:$0xff] %vm933_vm2, %v1267_v44 }
 0x267   : > { %1317 = vst.msk [vmem:[%s2437_s6 + $0x38] sm:$0xff] %vm933_vm2, %v1247_v0 }
 0x268 PF: > { %s12_s11 = sadd.s32 1, %s1623_s11   ;;  %s2552_s9 = smov %s1619_s10 }
 0x269   : > { %p9_p5 = scmp.ge.s32.totalorder %s12_s11, 4   ;;  %s2553_s10 = smov %s2555_s12 }
 0x26b   :  { %11 = sbr.rel (!%p9_p5) target bundleno = 2 (0x2), region = 59 }

</bundles_post_ra>
